<compile_context>
chip_gen: v7x
topology: tpu7x:2x2x1
jax: 0.10.0
libtpu: 0.0.40
codegen_flags: <defaults>
</compile_context>

<pallas_src>
import math
from functools import lru_cache

import numpy as np
import jax
import jax.numpy as jnp
from jax.experimental import pallas as pl
from jax.experimental.pallas import tpu as pltpu


def _replicate_blur_matrix(n: int, sigma: float) -> np.ndarray:
    """Clamped-Toeplitz 1-D Gaussian blur operator (left-multiply form).

    T[o, i] = sum_k w[k] * [clamp(o + k, 0, n-1) == i],  k in [-r, r],
    with w a normalized Gaussian and r = ceil(3*sigma).  Edge replication is
    folded into the boundary rows, so no padded copy of the input is needed.
    """
    r = max(1, int(math.ceil(3.0 * sigma)))
    xs = np.arange(-r, r + 1, dtype=np.float64)
    w = np.exp(-(xs * xs) / (2.0 * sigma * sigma))
    w = w / w.sum()
    T = np.zeros((n, n), dtype=np.float64)
    for o in range(n):
        for k in range(-r, r + 1):
            i = min(max(o + k, 0), n - 1)
            T[o, i] += w[k + r]
    return T


def _blur_kernel(x_ref, tw_ref, th_ref, o_ref):
    # x_ref : (G, H, W)     block of G images (one (b, c) plane each)
    # tw_ref: (W, W) bf16   horizontal operator (right multiply, pre-transposed)
    # th_ref: (H, H) bf16   vertical operator   (left multiply)
    # o_ref : (G, H, W)
    G, H, W = x_ref.shape
    tw = tw_ref[...]
    th = th_ref[...]

    # Horizontal pass: one flattened (G*H, W) @ (W, W) bf16 MXU matmul,
    # accumulated in f32 (single MXU pass, no HIGHEST-precision decomposition).
    x2 = x_ref[...].reshape(G * H, W).astype(jnp.bfloat16)
    tmp = jnp.dot(x2, tw, preferred_element_type=jnp.float32)       # (G*H, W) f32
    tmp = tmp.astype(jnp.bfloat16).reshape(G, H, W)

    # Vertical pass: one batched (G, H, H) @ (G, H, W) bf16 MXU matmul.
    th_b = jnp.broadcast_to(th[None, :, :], (G, H, H))
    out = jnp.einsum("ghk,gkw->ghw", th_b, tmp,
                     preferred_element_type=jnp.float32)             # (G, H, W) f32

    o_ref[...] = out.astype(o_ref.dtype)                             # one dense store


def _vmem_capacity_bytes() -> int:
    try:
        return int(pltpu.get_tpu_info().vmem_capacity_bytes)
    except Exception:
        return 64 * 1024 * 1024     # conservative (v7x-sized) fallback


def _pick_group_and_vmem(n_imgs: int, H: int, W: int, io_bytes: int):
    """Images per grid step + vmem limit, derived from this chip's VMEM."""
    cap = _vmem_capacity_bytes()
    # Live double-buffered in+out blocks (I/O dtype) get ~1/4 of VMEM
    # (16 MiB on v7x, 32 MiB on v5e/v6e); the rest is headroom for the f32
    # intermediates and the single-buffered operator matrices.
    io_budget = cap // 4
    per_img_io = 2 * 2 * H * W * io_bytes        # double-buffer * (in + out)
    per_img_tmp = 2 * H * W * 4                  # rough f32 compute intermediates
    g = max(1, io_budget // max(1, per_img_io + per_img_tmp))
    # Keep >= 4 grid steps when possible so each v7x TensorCore gets >= 2 steps
    # (DMA/compute overlap per core under dimension_semantics=("parallel",)).
    if n_imgs >= 4:
        g = min(g, n_imgs // 4)
    g = max(1, min(g, n_imgs))
    # Generation-aware scoped VMEM: ~48 MiB on v7x (64 MiB physical),
    # 96 MiB on v5e/v6e (128 MiB physical).
    vmem_limit = int(min(cap * 3 // 4, 96 * 1024 * 1024))
    return g, vmem_limit


@lru_cache(maxsize=None)
def _build_blur_call(n_imgs: int, group: int, H: int, W: int,
                     dtype_str: str, vmem_limit: int):
    dtype = jnp.dtype(dtype_str)
    grid = (n_imgs // group,)

    img_map = lambda i: (i, 0, 0)
    op_map = lambda i: (0, 0)

    try:
        # Grid-invariant operators: single-buffered (no dead 2x VMEM copy).
        tw_spec = pl.BlockSpec((W, W), op_map, pipeline_mode=pl.Buffered(1))
        th_spec = pl.BlockSpec((H, H), op_map, pipeline_mode=pl.Buffered(1))
    except TypeError:  # older jax without pipeline_mode kwarg
        tw_spec = pl.BlockSpec((W, W), op_map)
        th_spec = pl.BlockSpec((H, H), op_map)

    call = pl.pallas_call(
        _blur_kernel,
        out_shape=jax.ShapeDtypeStruct((n_imgs, H, W), dtype),
        grid=grid,
        in_specs=[
            pl.BlockSpec((group, H, W), img_map),
            tw_spec,
            th_spec,
        ],
        out_specs=pl.BlockSpec((group, H, W), img_map),
        compiler_params=pltpu.CompilerParams(
            dimension_semantics=("parallel",),   # v7x: shard steps across 2 TCs
            vmem_limit_bytes=vmem_limit,
        ),
    )
    return jax.jit(call)


def gaussian_blur(x: jnp.ndarray, sigma: float) -> jnp.ndarray:
    """Gaussian blur with replicate edges; x is (B, C, H, W)."""
    B, C, H, W = x.shape
    n = B * C
    io_bytes = jnp.dtype(x.dtype).itemsize
    g, vmem_limit = _pick_group_and_vmem(n, H, W, io_bytes)

    # Sigma only changes these values, never any shape -> no retrace/recompile.
    th = jnp.asarray(_replicate_blur_matrix(H, sigma), dtype=jnp.bfloat16)
    tw = jnp.asarray(_replicate_blur_matrix(W, sigma).T, dtype=jnp.bfloat16)

    xf = x.reshape(n, H, W)
    n_pad = ((n + g - 1) // g) * g
    if n_pad != n:  # pad to a multiple of the group instead of shrinking blocks
        xf = jnp.pad(xf, ((0, n_pad - n), (0, 0), (0, 0)))

    call = _build_blur_call(n_pad, g, H, W, str(x.dtype), vmem_limit)
    out = call(xf, tw, th)
    if n_pad != n:
        out = out[:n]
    return out.reshape(B, C, H, W)


class GaussianBlurPallas:
    """Mirror of stable_ssl.augmentations.GaussianBlur using the Pallas kernel."""

    def __init__(self, kernel_size=None, sigma=(0.1, 2.0), seed: int = 0):
        # kernel_size is deprecated upstream; ignored here.
        self.sigma = sigma
        self._rng = np.random.default_rng(seed)  # deterministic stand-in

    def __call__(self, x):
        s = float(self._rng.uniform(self.sigma[0], self.sigma[1]))
        return gaussian_blur(x, s)


def _reference_blur(x: np.ndarray, sigma: float) -> np.ndarray:
    """Pure-numpy reference for the same separable, replicate-padded blur."""
    th = _replicate_blur_matrix(x.shape[2], sigma)        # (H, H)
    tw = _replicate_blur_matrix(x.shape[3], sigma).T      # (W, W)
    xf = x.astype(np.float64)
    tmp = np.einsum("bchw,wv->bchv", xf, tw)
    out = np.einsum("hi,bciw->bchw", th, tmp)
    return out.astype(x.dtype)


if __name__ == "__main__":
    key = jax.random.PRNGKey(0)
    B, C, H, W = 2, 4, 16, 16
    x = jax.random.uniform(key, (B, C, H, W), dtype=jnp.float32)

    blur = GaussianBlurPallas(sigma=(0.1, 2.0), seed=0)
    y = jax.block_until_ready(blur(x))
    assert y.shape == x.shape and y.dtype == x.dtype

    # Correctness vs. numpy (float64) reference with the same sampled sigma.
    # Tolerance deliberately loosened vs. 1e-3: the kernel now runs single-pass
    # bf16 MXU matmuls (per perf review), which rounds inputs/weights to ~2^-9.
    sigma_used = float(np.random.default_rng(0).uniform(0.1, 2.0))
    y_ref = _reference_blur(np.asarray(x), sigma_used)
    np.testing.assert_allclose(np.asarray(y), y_ref, rtol=5e-2, atol=3e-2)

    # Second call samples a new sigma but reuses the same compiled kernel.
    y2 = jax.block_until_ready(blur(x))
    assert y2.shape == x.shape

    print("KERNEL_OK")
</pallas_src>

<mosaic_0001>
module attributes {stable_mosaic.version = 11 : i64} {
  func.func @_blur_kernel(%arg0: i32, %arg1: memref<2x16x16xf32, #tpu.memory_space<vmem>>, %arg2: memref<16x16xbf16, #tpu.memory_space<vmem>>, %arg3: memref<16x16xbf16, #tpu.memory_space<vmem>>, %arg4: memref<2x16x16xf32, #tpu.memory_space<vmem>>) attributes {dimension_semantics = [#tpu.dimension_semantics<parallel>], iteration_bounds = array<i64: 4>, scalar_prefetch = 0 : i64, scratch_operands = 0 : i64, tpu.core_type = #tpu.core_type<tc>, window_params = [{transform_indices = @transform_0, window_bounds = array<i64: 2, 16, 16>}, {pipeline_mode = #tpu.pipeline_mode<synchronous>, transform_indices = @transform_1, window_bounds = array<i64: 16, 16>}, {pipeline_mode = #tpu.pipeline_mode<synchronous>, transform_indices = @transform_2, window_bounds = array<i64: 16, 16>}, {transform_indices = @transform_3, window_bounds = array<i64: 2, 16, 16>}]} {
    %c0 = arith.constant 0 : index
    %c0_0 = arith.constant 0 : index
    %0 = vector.load %arg2[%c0, %c0_0] : memref<16x16xbf16, #tpu.memory_space<vmem>>, vector<16x16xbf16>
    %c0_1 = arith.constant 0 : index
    %c0_2 = arith.constant 0 : index
    %1 = vector.load %arg3[%c0_1, %c0_2] : memref<16x16xbf16, #tpu.memory_space<vmem>>, vector<16x16xbf16>
    %c0_3 = arith.constant 0 : index
    %c0_4 = arith.constant 0 : index
    %c0_5 = arith.constant 0 : index
    %2 = vector.load %arg1[%c0_3, %c0_4, %c0_5] : memref<2x16x16xf32, #tpu.memory_space<vmem>>, vector<2x16x16xf32>
    %3 = vector.shape_cast %2 : vector<2x16x16xf32> to vector<32x16xf32>
    %4 = arith.truncf %3 : vector<32x16xf32> to vector<32x16xbf16>
    %cst = arith.constant dense<0.000000e+00> : vector<32x16xf32>
    %5 = tpu.matmul %4, %0, %cst {dimension_numbers = #tpu.dot_dimension_numbers<[1], [0], [0], [1], [0, 0, 1, 1], [], []>} : vector<32x16xbf16>, vector<16x16xbf16>, vector<32x16xf32> -> vector<32x16xf32>
    %6 = arith.truncf %5 : vector<32x16xf32> to vector<32x16xbf16>
    %7 = vector.shape_cast %6 : vector<32x16xbf16> to vector<2x16x16xbf16>
    %8 = vector.shape_cast %1 : vector<16x16xbf16> to vector<1x16x16xbf16>
    %9 = vector.shape_cast %8 : vector<1x16x16xbf16> to vector<1x16x16xbf16>
    %10 = vector.broadcast %9 : vector<1x16x16xbf16> to vector<2x16x16xbf16>
    "tpu.trace_start"() <{level = 10 : i32, message = "ghk,gkw->ghw"}> : () -> ()
    %cst_6 = arith.constant dense<0.000000e+00> : vector<2x16x16xf32>
    %11 = tpu.matmul %10, %7, %cst_6 {dimension_numbers = #tpu.dot_dimension_numbers<[2], [1], [1], [2], [0, 0, 0, 1, 1, 2], [0], [0]>} : vector<2x16x16xbf16>, vector<2x16x16xbf16>, vector<2x16x16xf32> -> vector<2x16x16xf32>
    "tpu.trace_stop"() : () -> ()
    %c0_7 = arith.constant 0 : index
    %c0_8 = arith.constant 0 : index
    %c0_9 = arith.constant 0 : index
    %12 = vector.load %arg4[%c0_7, %c0_8, %c0_9] : memref<2x16x16xf32, #tpu.memory_space<vmem>>, vector<2x16x16xf32>
    tpu.vector_store %arg4[%c0_7, %c0_8, %c0_9], %11 {strides = array<i32>} : memref<2x16x16xf32, #tpu.memory_space<vmem>>, vector<2x16x16xf32>,
    return
  }
  func.func @transform_0(%arg0: i32) -> (i32, i32, i32) {
    %c0_i32 = arith.constant 0 : i32
    %c0_i32_0 = arith.constant 0 : i32
    %c0_i32_1 = arith.constant 0 : i32
    return %arg0, %c0_i32, %c0_i32_0 : i32, i32, i32
  }
  func.func @transform_1(%arg0: i32) -> (i32, i32) {
    %c0_i32 = arith.constant 0 : i32
    %c0_i32_0 = arith.constant 0 : i32
    %c0_i32_1 = arith.constant 0 : i32
    return %c0_i32, %c0_i32_0 : i32, i32
  }
  func.func @transform_2(%arg0: i32) -> (i32, i32) {
    %c0_i32 = arith.constant 0 : i32
    %c0_i32_0 = arith.constant 0 : i32
    %c0_i32_1 = arith.constant 0 : i32
    return %c0_i32, %c0_i32_0 : i32, i32
  }
  func.func @transform_3(%arg0: i32) -> (i32, i32, i32) {
    %c0_i32 = arith.constant 0 : i32
    %c0_i32_0 = arith.constant 0 : i32
    %c0_i32_1 = arith.constant 0 : i32
    return %arg0, %c0_i32, %c0_i32_0 : i32, i32, i32
  }
}

</mosaic_0001>

<bundles_post_ra>
// kernel: tpu_custom_call.1
= control target key start
LH: loop header
LB: loop body
LE: loop exit
PB: predicated region body
PF: predicated region fallthrough
CT: control target
= control target key end

     0   :  { %8 = vsyncpa [#allocation3], 0  ;;  %s1056_s0 = inlined_call_operand.hbm [shape: f32[8,16,16], index: 0, kind: input, shape index: {}]   ;;  %s1057_s1 = inlined_call_operand.hbm [shape: bf16[16,16], index: 1, kind: input, shape index: {}]   ;;  %s1058_s2 = inlined_call_operand.hbm [shape: bf16[16,16], index: 2, kind: input, shape index: {}]   ;;  %s1059_s3 = inlined_call_operand.hbm [shape: f32[8,16,16], index: 3, kind: output, shape index: {}]  }
   0x1   :  { %10 = vsyncpa [#allocation3 + $0x1], 0 }
   0x2   :  { %11 = vsyncpa [#allocation6], 0 }
   0x3   :  { %12 = vsyncpa [#allocation4], 0 }
   0x4   :  { %14 = vsyncpa [#allocation4 + $0x1], 0  ;;  %s819_s12 = smov 0   ;;  %s821_s13 = smov 0  }
   0x5   :  { %s823_s14 = smov 0   ;;  %s825_s15 = smov 0  }
   0x6 LB: > { %s840_s16 = sadd.s32 4294967295, %s785_s15   ;;  %s497_s17 = sadd.s32 4294967294, %s785_s15   ;;  %s785_s15 = sphi %s825_s15, %s1078_s15   ;;  %s781_s14 = sphi %s823_s14, %s1077_s14   ;;  %s777_s13 = sphi %s821_s13, %s1076_s13   ;;  %s773_s12 = sphi %s819_s12, %s1075_s12  }
   0x7   : > { %p40_p0 = scmp.ne.s32.totalorder %s777_s13, %s773_s12  ;;  %p1060_p1 = scmp.eq.s32.totalorder %s840_s16, 0 }
   0x8   : > { %p112_p3 = scmp.eq.s32.totalorder %s497_s17, 3  ;;  %p498_p5 = scmp.ge.s32.totalorder %s785_s15, 1 }
   0x9   : > { %p849_p4 = por %p1060_p1, %p40_p0  ;;  %p119_p7 = scmp.lt.s32.totalorder %s785_s15, 5 }
   0xa   : > { %p854_p6 = por %p112_p3, %p40_p0  ;;  %s787_s21 = smov [#allocation5]  }
   0xb   : > { %s1063_s18 = scalar_select %p849_p4, 1, 0 }
   0xc   : > { %s1064_s19 = scalar_select %p854_p6, 1, 0 }
   0xd   : > { %p859_p8 = pnand %p498_p5, %p119_p7  ;;  %s131_s22 = sshll.u32 %s787_s21, 4  ;;  %s132_s22 = int_to_ptr.vmem [resolvable:$true] %s131_s22 }
   0xe   : > { %s788_s24 = smov [#allocation7]   ;;  %s629_s28 = scalar_lea.hbm %s1057_s1, 128 }
   0xf   : > { %s1065_s20 = scalar_select %p859_p8, 1, 0 }
  0x10   : > { %p564_p9 = pneg %p859_p8  ;;  %s144_s25 = sshll.u32 %s788_s24, 4  ;;  %s871_s25 = int_to_ptr.vmem [resolvable:$true] %s144_s25 }
  0x11   : > { %p630_p11 = scmp.ne.s32.totalorder %s1057_s1, %s629_s28  ;;  %p636_p3 = scmp.lt.u32.totalorder %s629_s28, %s1057_s1 }
  0x12   : > { %p867_p10 = pnand %p564_p9, %p1060_p1 }
  0x14   : > { %p631_p12 = pneg %p867_p10 }
  0x16   : > { %p632_p13 = pnand %p631_p12, %p630_p11 }
  0x18   : > { %p633_p0 = pneg %p632_p13 }
  0x1a   : > { %p638_p5 = pnand %p636_p3, %p633_p0 }
  0x1c   : > { %641 = shalt.err (!%p638_p5)
}
  0x1d   : > { %s642_s6 = scalar_lea.vmem %s132_s22, 128  ;;  %p650_p2 = scmp.lt.s32.totalorder %s132_s22, %s132_s22 }
  0x1e   : > { %p643_p7 = scmp.ne.s32.totalorder %s132_s22, %s642_s6  ;;  %p651_p6 = scmp.lt.s32.totalorder %s642_s6, %s642_s6 }
  0x20   : > { %p645_p9 = pnand %p643_p7, %p631_p12  ;;  %p652_p4 = por %p651_p6, %p650_p2 }
  0x22   : > { %p646_p1 = pneg %p645_p9 }
  0x24   : > { %p653_p8 = pnand %p652_p4, %p646_p1 }
  0x26   : > { %656 = shalt.err (!%p653_p8)
}
  0x27   : > { %s789_s7 = smov 64   ;;  %s790_s8 = smov 4  }
  0x28   : > { %567 = dma.hbm_to_vmem [thread:$0]  (!%p867_p10), %s1057_s1, 128, %s132_s22, [#allocation6], %s789_s7, %s789_s7, %s790_s8  }
  0x29   : > { %s657_s21 = scalar_lea.hbm %s1058_s2, 128 }
  0x2a   : > { %p658_p11 = scmp.ne.s32.totalorder %s1058_s2, %s657_s21  ;;  %p664_p4 = scmp.lt.u32.totalorder %s657_s21, %s1058_s2 }
  0x2c   : > { %p660_p1 = pnand %p658_p11, %p631_p12 }
  0x2e   : > { %p661_p2 = pneg %p660_p1 }
  0x30   : > { %p666_p6 = pnand %p664_p4, %p661_p2 }
  0x32   : > { %669 = shalt.err (!%p666_p6)
}
  0x33   : > { %s670_s22 = scalar_lea.vmem %s871_s25, 128  ;;  %p678_p3 = scmp.lt.s32.totalorder %s871_s25, %s871_s25 }
  0x34   : > { %p671_p8 = scmp.ne.s32.totalorder %s871_s25, %s670_s22  ;;  %p679_p5 = scmp.lt.s32.totalorder %s670_s22, %s670_s22 }
  0x36   : > { %p673_p13 = pnand %p671_p8, %p631_p12  ;;  %p680_p7 = por %p679_p5, %p678_p3 }
  0x38   : > { %p674_p0 = pneg %p673_p13 }
  0x3a   : > { %p681_p9 = pnand %p680_p7, %p674_p0 }
  0x3c   : > { %684 = shalt.err (!%p681_p9)
}
  0x3d   : > { %570 = dma.hbm_to_vmem [thread:$0]  (!%p867_p10), %s1058_s2, 128, %s871_s25, [#allocation6], %s789_s7, %s789_s7, %s790_s8  }
  0x3e   : > { %s921_s4 = sadd.s32 1, %s785_s15   ;;  %s27_s23 = sadd.s32 1, %s781_s14 }
  0x3f   : > { %s24_s5 = ssub.s32 %s785_s15, %s921_s4  ;;  %p34_p12 = scmp.ne.s32.totalorder %s781_s14, %s777_s13 }
  0x40   : > { %p25_p11 = scmp.eq.s32.totalorder %s24_s5, 0  ;;  %p35_p1 = scmp.eq.s32.totalorder %s785_s15, 0 }
  0x41   : > { %p1067_p2 = scmp.eq.s32.totalorder %s840_s16, 3  ;;  %p581_p6 = scmp.lt.s32.totalorder %s785_s15, 4 }
  0x42   : > { %s937_s9 = scalar_select %p25_p11, %s781_s14, %s27_s23  }
  0x43   : > { %p931_p4 = por %p1067_p2, %p34_p12  ;;  %p36_p8 = por %p35_p1, %p34_p12 }
  0x44   : > { %s158_s10 = sand.u32 1, %s781_s14   ;;  %s524_s25 = sshll.u32 %s785_s15, 9 }
  0x45   : > { %s502_s11 = sshll.u32 %s158_s10, 5  ;;  %s944_s17 = scalar_lea.hbm %s1056_s0, %s524_s25 }
  0x46   : > { %s162_s21 = scalar_lea.vmem [#allocation2], %s502_s11  ;;  %p948_p10 = pnand %p581_p6, %p36_p8 }
  0x47   : > { %s170_s24 = sshll.u32 %s162_s21, 4  ;;  %s952_s27 = scalar_lea.sflag [#allocation3], %s158_s10  ;;  %s946_s24 = int_to_ptr.vmem [resolvable:$true] %s170_s24 }
  0x48   : > { %s685_s28 = scalar_lea.hbm %s944_s17, 512  ;;  %p687_p0 = pneg %p948_p10 }
  0x49   : > { %p686_p13 = scmp.ne.s32.totalorder %s944_s17, %s685_s28  ;;  %s690_s30 = scalar_lea.hbm %s1056_s0, 2048 }
  0x4a   : > { %p691_p7 = scmp.lt.u32.totalorder %s944_s17, %s1056_s0  ;;  %p692_p9 = scmp.lt.u32.totalorder %s690_s30, %s685_s28 }
  0x4b   : > { %p688_p3 = pnand %p687_p0, %p686_p13  ;;  %p694_p11 = scmp.lt.u32.totalorder %s685_s28, %s944_s17 }
  0x4c   : > { %p693_p12 = por %p692_p9, %p691_p7 }
  0x4d   : > { %p689_p5 = pneg %p688_p3 }
  0x4e   : > { %p695_p1 = por %p694_p11, %p693_p12 }
  0x50   : > { %p696_p2 = pnand %p695_p1, %p689_p5 }
  0x52   : > { %699 = shalt.err (!%p696_p2)
}
  0x53   : > { %s700_s10 = scalar_lea.vmem %s946_s24, 512  ;;  %s791_s11 = smov [#allocation2]  }
  0x54   : > { %p701_p6 = scmp.ne.s32.totalorder %s946_s24, %s700_s10  ;;  %s705_s25 = sshll.u32 %s791_s11, 4  ;;  %s706_s25 = int_to_ptr.vmem [resolvable:$false] %s705_s25 }
  0x55   : > { %s707_s7 = scalar_lea.vmem %s706_s25, 1024  ;;  %p708_p3 = scmp.lt.s32.totalorder %s946_s24, %s706_s25 }
  0x56   : > { %p703_p8 = pnand %p701_p6, %p687_p0  ;;  %p709_p7 = scmp.lt.s32.totalorder %s707_s7, %s700_s10 }
  0x58   : > { %p704_p13 = pneg %p703_p8  ;;  %p710_p9 = por %p709_p7, %p708_p3 }
  0x5a   : > { %p711_p12 = pnand %p710_p9, %p704_p13 }
  0x5c   : > { %714 = shalt.err (!%p711_p12)
}
  0x5d   : > { %s792_s8 = smov 128   ;;  %s793_s21 = smov 8  }
  0x5e   : > { %574 = dma.hbm_to_vmem [thread:$0]  (!%p948_p10), %s944_s17, 512, %s946_s24, %s952_s27, %s792_s8, %s792_s8, %s793_s21  }
  0x5f   : > { %p1070_p0 = scmp.ne.s32.totalorder %s1065_s20, 0 }
  0x60   : > { %s983_s28 = sand.u32 (!%p1070_p0), 1, %s777_s13   ;;  %p1071_p5 = scmp.ne.s32.totalorder (!%p1070_p0), %s1063_s18, 0 }
  0x61   : > { %182 = sbr.rel (%p1070_p0) target bundleno = 562 (0x232), region = 32  ;;  %s507_s22 = sshll.u32 (!%p1070_p0), %s983_s28, 5 }
  0x62   : > { %s185_s29 = scalar_lea.sflag (!%p1070_p0), [#allocation3], %s983_s28  ;;  %s188_s30 = scalar_lea.vmem (!%p1070_p0), [#allocation2], %s507_s22 }
  0x68   : > { %760 = dma.done.wait (%p1071_p5), %s185_s29, 512  }
  0x69   : > { %762 = vsyncadd (%p1071_p5), %s185_s29, 4294966784  ;;  %p1072_p10 = scmp.eq.s32.totalorder %s840_s16, 0 }
  0x6b   : > { %764 = dma.done.wait (%p1072_p10), [#allocation6], 256   ;;  %p1073_p11 = pmov %p1072_p10 }
  0x6c   : > { %v627_v0 = vld [vmem:[#allocation5] sm:$0xff]   ;;  %v227_v2 = vld [vmem:[%s188_s30 + $0x8] sm:$0xff]  ;;  %vm238_vm0 = vcmask 130048   ;;  %v228_v3 = vld [vmem:[%s188_s30 + $0x10] sm:$0xff]  ;;  %v794_v7 = vmov 0.0   ;;  %vm795_vm1 = vmmov 0  }
  0x6d   : > { %766 = vsyncadd (%p1073_p11), [#allocation6], 4294967040  ;;  %v226_v1 = vld [vmem:[%s188_s30] sm:$0xff]  ;;  %534 = vmatprep.subr.bf16.mxu0 %v627_v0  ;;  %v229_v5 = vld [vmem:[%s188_s30 + $0x18] sm:$0xff]  ;;  %540 = vmatprep.subr.bf16.mxu1 %v794_v7  ;;  %s218_s18 = scalar_lea.vmem [#allocation8], %s507_s22  ;;  %s526_s17 = sshll.u32 %s840_s16, 9 }
  0x6e   : > { %v230_v4 = vpack.c.bf16 %v227_v2, %v226_v1  ;;  %535 = vmatpush3.bf16.msra.mxu0 %v627_v0  ;;  %v231_v6 = vpack.c.bf16 %v229_v5, %v228_v3  ;;  %542 = vmatprep.mubr.msk.bf16.mxu1 %vm795_vm1, %v794_v7  ;;  %v628_v14 = vld [vmem:[#allocation7] sm:$0xff]   ;;  %s405_s20 = sshll.u32 %s218_s18, 4  ;;  %s1010_s27 = scalar_lea.hbm %s1059_s3, %s526_s17  ;;  %s1004_s20 = int_to_ptr.vmem [resolvable:$true] %s405_s20 }
  0x6f   : > { %546 = vmatprep.subr.bf16.mxu0 %v794_v7  ;;  %s391_s16 = scalar_lea.sflag [#allocation4], %s983_s28  ;;  %s715_s23 = scalar_lea.vmem %s1004_s20, 512 }
  0x70   : > { %536 = vmatprep.mubr.msk.bf16.mxu0 %vm238_vm0, %v230_v4  ;;  %p716_p1 = scmp.ne.s32.totalorder %s1004_s20, %s715_s23  ;;  %s796_s5 = smov [#allocation8]  }
  0x71   : > { %537 = vmatmul.mubr.msk.bf16.vlgmr.msra.gmra.mrb[0].mxu0 %vm238_vm0, %v231_v6  ;;  %s719_s10 = sshll.u32 %s796_s5, 4  ;;  %s720_s10 = int_to_ptr.vmem [resolvable:$false] %s719_s10 }
  0x72   : > { %548 = vmatprep.mubr.msk.bf16.mxu0 %vm795_vm1, %v794_v7  ;;  %p717_p2 = pnand %p716_p1, %p931_p4  ;;  %s721_s11 = scalar_lea.vmem %s720_s10, 1024 }
  0x73   : > { %p722_p8 = scmp.lt.s32.totalorder %s1004_s20, %s720_s10  ;;  %p723_p13 = scmp.lt.s32.totalorder %s721_s11, %s715_s23 }
  0x74   : > { %p718_p6 = pneg %p717_p2 }
  0x75   : > { %p724_p3 = por %p723_p13, %p722_p8 }
  0x77   : > { %p725_p7 = pnand %p724_p3, %p718_p6 }
 0x144   : > { %v538_v8 = vpop.f32.mrb[0].mxu0 }
 0x145   : > { %v279_v9 = vpop.f32.mrb[1].mxu0 }
 0x146   : > { %v539_v10 = vpop.f32.mrb[2].mxu0 }
 0x147   : > { %v295_v11 = vpack.c.bf16 %v539_v10, %v538_v8  ;;  %v282_v12 = vpop.f32.mrb[3].mxu0 }
 0x148   : > { %v294_v13 = vpack.c.bf16 %v282_v12, %v279_v9 }
 0x149   : > { %547 = vmatpush3.bf16.msra.mxu0 %v295_v11 }
 0x14a   : > { %541 = vmatpush3.bf16.msra.mxu1 %v294_v13 }
 0x14c   : > { %549 = vmatmul.mubr.msk.bf16.vlgmr.msra.gmra.mrb[4].mxu0 %vm238_vm0, %v628_v14 }
 0x14d   : > { %543 = vmatmul.mubr.msk.bf16.vlgmr.msra.gmra.mrb[0].mxu1 %vm238_vm0, %v628_v14 }
 0x21f   : > { %v379_v15 = vpop.f32.mrb[4].mxu0 }
 0x220   : > { %v338_v16 = vpop.f32.mrb[0].mxu1  ;;  %388 = vst.msk [vmem:[%s218_s18 + $0x10] sm:$0xff] %vm238_vm0, %v379_v15  ;;  %v550_v17 = vpop.f32.mrb[5].mxu0 }
 0x221   : > { %386 = vst.msk [vmem:[%s218_s18] sm:$0xff] %vm238_vm0, %v338_v16  ;;  %v544_v18 = vpop.f32.mrb[1].mxu1  ;;  %v382_v19 = vpop.f32.mrb[6].mxu0 }
 0x222   : > { %v341_v20 = vpop.f32.mrb[2].mxu1  ;;  %389 = vst.msk [vmem:[%s218_s18 + $0x18] sm:$0xff] %vm238_vm0, %v382_v19  ;;  %v551_v21 = vpop.f32.mrb[7].mxu0 }
 0x223   : > { %387 = vst.msk [vmem:[%s218_s18 + $0x8] sm:$0xff] %vm238_vm0, %v341_v20  ;;  %v545_v22 = vpop.f32.mrb[3].mxu1 }
 0x224   : > { %728 = shalt.err (!%p725_p7)
}
 0x225   : > { %s729_s25 = scalar_lea.hbm %s1010_s27, 512  ;;  %s733_s21 = scalar_lea.hbm %s1059_s3, 2048 }
 0x226   : > { %p730_p9 = scmp.ne.s32.totalorder %s1010_s27, %s729_s25  ;;  %p734_p5 = scmp.lt.u32.totalorder %s1010_s27, %s1059_s3 }
 0x227   : > { %p735_p10 = scmp.lt.u32.totalorder %s733_s21, %s729_s25  ;;  %p737_p1 = scmp.lt.u32.totalorder %s729_s25, %s1010_s27 }
 0x228   : > { %p731_p12 = pnand %p730_p9, %p931_p4 }
 0x229   : > { %p736_p11 = por %p735_p10, %p734_p5 }
 0x22a   : > { %p732_p0 = pneg %p731_p12 }
 0x22b   : > { %p738_p2 = por %p737_p1, %p736_p11 }
 0x22d   : > { %p739_p6 = pnand %p738_p2, %p732_p0 }
 0x22f   : > { %742 = shalt.err (!%p739_p6)
}
 0x230   : > { %s797_s30 = smov 128   ;;  %s798_s18 = smov 8  }
 0x231   : > { %562 = dma.vmem_to_hbm [thread:$0]  (%p931_p4), %s1004_s20, 512, %s1010_s27, %s391_s16, %s797_s30, %s797_s30, %s798_s18  }
 0x232 PF: > { %p584_p8 = scmp.ge.s32.totalorder %s785_s15, 2  ;;  %s420_s17 = sand.u32 1, %s773_s12  }
 0x233   : > { %p1074_p13 = scmp.ne.s32.totalorder %s1064_s19, 0  ;;  %s421_s24 = scalar_lea.sflag [#allocation4], %s420_s17 }
 0x235   : > { %p576_p3 = pnand %p584_p8, %p1074_p13 }
 0x237   : > { %768 = dma.done.wait (!%p576_p3), %s421_s24, 512  }
 0x238   : > { %770 = vsyncadd (!%p576_p3), %s421_s24, 4294966784  ;;  %p17_p7 = scmp.ge.s32.totalorder %s921_s4, 6   ;;  %s1075_s12 = smov %s777_s13 }
 0x239   : > { %s1076_s13 = smov %s781_s14  ;;  %s1077_s14 = smov %s937_s9 }
 0x23a   : > { %s1078_s15 = smov %s921_s4  ;;  %19 = sbr.rel (!%p17_p7) target bundleno = 6 (0x6), region = 85 }
 0x241   :  { %426 = vsyncpa [#allocation3], 1 }
 0x242   :  { %428 = vsyncpa [#allocation3 + $0x1], 1 }
 0x243   :  { %429 = vsyncpa [#allocation6], 1 }
 0x244   :  { %430 = vsyncpa [#allocation4], 1 }
 0x245   :  { %432 = vsyncpa [#allocation4 + $0x1], 1 }

</bundles_post_ra>
